<compile_context>
chip_gen: v6e
topology: v6e:2x2x1
jax: 0.10.0
libtpu: 0.0.40
codegen_flags: <defaults>
</compile_context>

<pallas_src>
import jax
import jax.numpy as jnp
from jax.experimental import pallas as pl
from jax.experimental.pallas import tpu as pltpu

EPS = 1e-12  # F.normalize default eps


def _round_up(v, m):
    return (v + m - 1) // m * m


def normed_linear_kernel(x_ref, w_ref, inv_xn_ref, inv_wn_ref, o_ref, acc_ref):
    k = pl.program_id(2)

    @pl.when(k == 0)
    def _init():
        acc_ref[...] = jnp.zeros_like(acc_ref)

    # Hot loop: pure MXU matmul with f32 accumulation.
    acc_ref[...] += jnp.dot(x_ref[...], w_ref[...], preferred_element_type=jnp.float32)

    @pl.when(k == pl.num_programs(2) - 1)
    def _finalize():
        # Diagonal-scaling epilogue: per-row (tm,1) and per-column (1,tn) inverse L2 norms.
        scaled = acc_ref[...] * inv_xn_ref[...] * inv_wn_ref[...]
        o_ref[...] = scaled.astype(o_ref.dtype)


def normed_linear(x, weight, *, tm=256, tn=256, tk=512, operand_dtype=None,
                  vmem_limit_bytes=48 * 1024 * 1024):
    m, k_dim = x.shape
    k_w, n = weight.shape
    assert k_dim == k_w, "x inner dim must match weight rows"
    out_dtype = x.dtype

    # Inverse L2 norms hoisted out of the kernel (rsqrt -> EUP-class op, done once, not per tile).
    # rsqrt(max(sumsq, eps^2)) == 1 / max(||.||_2, eps) since sqrt is monotone.
    xf = x.astype(jnp.float32)
    wf = weight.astype(jnp.float32)
    inv_xn = jax.lax.rsqrt(jnp.maximum(jnp.sum(xf * xf, axis=1, keepdims=True), EPS * EPS))
    inv_wn = jax.lax.rsqrt(jnp.maximum(jnp.sum(wf * wf, axis=0, keepdims=True), EPS * EPS))

    if operand_dtype is not None:
        x = x.astype(operand_dtype)
        weight = weight.astype(operand_dtype)

    # Tile selection: full-extent block when the dim is smaller than the base tile,
    # otherwise tile at the base size and zero-pad the dim to a multiple of it.
    tm = m if m <= tm else tm
    tn = n if n <= tn else tn
    tk = k_dim if k_dim <= tk else tk
    m_pad, n_pad, k_pad = _round_up(m, tm), _round_up(n, tn), _round_up(k_dim, tk)

    if (m_pad, k_pad) != (m, k_dim):
        x = jnp.pad(x, ((0, m_pad - m), (0, k_pad - k_dim)))
    if (k_pad, n_pad) != (k_dim, n):
        weight = jnp.pad(weight, ((0, k_pad - k_dim), (0, n_pad - n)))
    if m_pad != m:
        inv_xn = jnp.pad(inv_xn, ((0, m_pad - m), (0, 0)))
    if n_pad != n:
        inv_wn = jnp.pad(inv_wn, ((0, 0), (0, n_pad - n)))

    grid = (m_pad // tm, n_pad // tn, k_pad // tk)
    op_bytes = jnp.dtype(x.dtype).itemsize
    out_bytes = jnp.dtype(out_dtype).itemsize

    out = pl.pallas_call(
        normed_linear_kernel,
        out_shape=jax.ShapeDtypeStruct((m_pad, n_pad), out_dtype),
        grid=grid,
        in_specs=[
            pl.BlockSpec((tm, tk), lambda i, j, k: (i, k)),   # x tile
            pl.BlockSpec((tk, tn), lambda i, j, k: (k, j)),   # weight tile
            pl.BlockSpec((tm, 1), lambda i, j, k: (i, 0)),    # inverse row norms of x
            pl.BlockSpec((1, tn), lambda i, j, k: (0, j)),    # inverse col norms of W
        ],
        out_specs=pl.BlockSpec((tm, tn), lambda i, j, k: (i, j)),
        scratch_shapes=[pltpu.VMEM((tm, tn), jnp.float32)],
        compiler_params=pltpu.CompilerParams(
            dimension_semantics=("parallel", "parallel", "arbitrary"),
            vmem_limit_bytes=vmem_limit_bytes,
        ),
        cost_estimate=pl.CostEstimate(
            flops=2 * m * n * k_dim,
            transcendentals=0,
            bytes_accessed=(m * k_dim + k_dim * n) * op_bytes + m * n * out_bytes,
        ),
    )(x, weight, inv_xn, inv_wn)

    if (m_pad, n_pad) != (m, n):
        out = out[:m, :n]
    return out


def init_normed_linear_weight(key, in_features, out_features):
    # Mirrors: weight.uniform_(-1, 1).renorm_(2, 1, 1e-5).mul_(1e5)
    w = jax.random.uniform(key, (in_features, out_features), jnp.float32, -1.0, 1.0)
    col_norm = jnp.sqrt(jnp.sum(w * w, axis=0, keepdims=True))
    maxnorm = 1e-5
    scale = jnp.where(col_norm > maxnorm, maxnorm / (col_norm + 1e-7), 1.0)
    return w * scale * 1e5


def reference(x, weight):
    xn = x / jnp.maximum(jnp.linalg.norm(x, axis=1, keepdims=True), EPS)
    wn = weight / jnp.maximum(jnp.linalg.norm(weight, axis=0, keepdims=True), EPS)
    return jnp.dot(xn, wn, precision=jax.lax.Precision.HIGHEST)


if __name__ == "__main__":
    key = jax.random.PRNGKey(0)
    k_x, k_w, k_x2, k_w2 = jax.random.split(key, 4)

    # Small shapes consistent with the module: batch=8 samples, in_features=32, out_features=128.
    batch, in_features, out_features = 8, 32, 128
    x = jax.random.normal(k_x, (batch, in_features), jnp.float32)
    weight = init_normed_linear_weight(k_w, in_features, out_features)

    out = jax.block_until_ready(normed_linear(x, weight))
    ref = reference(x, weight)
    assert out.shape == (batch, out_features)
    assert out.dtype == x.dtype
    assert jnp.allclose(out, ref, atol=1e-5, rtol=1e-5), "mismatch vs reference (small)"

    # Exercise the real tiled path: grid > 1 on every axis, K accumulation, K padding (320->384).
    m2, k2, n2 = 384, 320, 384
    x2 = jax.random.normal(k_x2, (m2, k2), jnp.float32)
    w2 = init_normed_linear_weight(k_w2, k2, n2)
    out2 = jax.block_until_ready(normed_linear(x2, w2, tm=128, tn=128, tk=128))
    ref2 = reference(x2, w2)
    assert jnp.allclose(out2, ref2, atol=1e-4, rtol=1e-4), "mismatch vs reference (tiled)"

    print("KERNEL_OK")
</pallas_src>

<mosaic_0001>
module attributes {stable_mosaic.version = 11 : i64} {
  func.func @normed_linear_kernel(%arg0: i32, %arg1: i32, %arg2: i32, %arg3: memref<8x32xf32, #tpu.memory_space<vmem>>, %arg4: memref<32x128xf32, #tpu.memory_space<vmem>>, %arg5: memref<8x1xf32, #tpu.memory_space<vmem>>, %arg6: memref<1x128xf32, #tpu.memory_space<vmem>>, %arg7: memref<8x128xf32, #tpu.memory_space<vmem>>, %arg8: memref<8x128xf32, #tpu.memory_space<vmem>>) attributes {dimension_semantics = [#tpu.dimension_semantics<parallel>, #tpu.dimension_semantics<parallel>, #tpu.dimension_semantics<arbitrary>], iteration_bounds = array<i64: 1, 1, 1>, scalar_prefetch = 0 : i64, scratch_operands = 1 : i64, tpu.core_type = #tpu.core_type<tc>, window_params = [{transform_indices = @transform_0, window_bounds = array<i64: 8, 32>}, {transform_indices = @transform_1, window_bounds = array<i64: 32, 128>}, {transform_indices = @transform_2, window_bounds = array<i64: 8, 1>}, {transform_indices = @transform_3, window_bounds = array<i64: 1, 128>}, {transform_indices = @transform_4, window_bounds = array<i64: 8, 128>}]} {
    %c0_i32 = arith.constant 0 : i32
    %0 = arith.cmpi eq, %arg2, %c0_i32 : i32
    %1 = arith.extui %0 : i1 to i32
    %c0_i32_0 = arith.constant 0 : i32
    %2 = arith.cmpi ne, %1, %c0_i32_0 : i32
    scf.if %2 {
      %cst_10 = arith.constant 0.000000e+00 : f32
      %12 = vector.broadcast %cst_10 : f32 to vector<8x128xf32>
      %c0_11 = arith.constant 0 : index
      %c0_12 = arith.constant 0 : index
      %13 = vector.load %arg8[%c0_11, %c0_12] : memref<8x128xf32, #tpu.memory_space<vmem>>, vector<8x128xf32>
      tpu.vector_store %arg8[%c0_11, %c0_12], %12 {strides = array<i32>} : memref<8x128xf32, #tpu.memory_space<vmem>>, vector<8x128xf32>,
    } else {
    }
    %c0 = arith.constant 0 : index
    %c0_1 = arith.constant 0 : index
    %3 = vector.load %arg8[%c0, %c0_1] : memref<8x128xf32, #tpu.memory_space<vmem>>, vector<8x128xf32>
    %c0_2 = arith.constant 0 : index
    %c0_3 = arith.constant 0 : index
    %4 = vector.load %arg3[%c0_2, %c0_3] : memref<8x32xf32, #tpu.memory_space<vmem>>, vector<8x32xf32>
    %c0_4 = arith.constant 0 : index
    %c0_5 = arith.constant 0 : index
    %5 = vector.load %arg4[%c0_4, %c0_5] : memref<32x128xf32, #tpu.memory_space<vmem>>, vector<32x128xf32>
    %cst = arith.constant dense<0.000000e+00> : vector<8x128xf32>
    %6 = tpu.matmul %4, %5, %cst {dimension_numbers = #tpu.dot_dimension_numbers<[1], [0], [0], [1], [0, 0, 1, 1], [], []>} : vector<8x32xf32>, vector<32x128xf32>, vector<8x128xf32> -> vector<8x128xf32>
    %7 = arith.addf %3, %6 : vector<8x128xf32>
    %c0_6 = arith.constant 0 : index
    %c0_7 = arith.constant 0 : index
    %8 = vector.load %arg8[%c0_6, %c0_7] : memref<8x128xf32, #tpu.memory_space<vmem>>, vector<8x128xf32>
    tpu.vector_store %arg8[%c0_6, %c0_7], %7 {strides = array<i32>} : memref<8x128xf32, #tpu.memory_space<vmem>>, vector<8x128xf32>,
    %c0_i32_8 = arith.constant 0 : i32
    %9 = arith.cmpi eq, %arg2, %c0_i32_8 : i32
    %10 = arith.extui %9 : i1 to i32
    %c0_i32_9 = arith.constant 0 : i32
    %11 = arith.cmpi ne, %10, %c0_i32_9 : i32
    scf.if %11 {
      %c0_10 = arith.constant 0 : index
      %c0_11 = arith.constant 0 : index
      %12 = vector.load %arg8[%c0_10, %c0_11] : memref<8x128xf32, #tpu.memory_space<vmem>>, vector<8x128xf32>
      %c0_12 = arith.constant 0 : index
      %c0_13 = arith.constant 0 : index
      %13 = vector.load %arg5[%c0_12, %c0_13] : memref<8x1xf32, #tpu.memory_space<vmem>>, vector<8x1xf32>
      %14 = vector.broadcast %13 : vector<8x1xf32> to vector<8x128xf32>
      %15 = arith.mulf %12, %14 : vector<8x128xf32>
      %c0_14 = arith.constant 0 : index
      %c0_15 = arith.constant 0 : index
      %16 = vector.load %arg6[%c0_14, %c0_15] : memref<1x128xf32, #tpu.memory_space<vmem>>, vector<1x128xf32>
      %17 = vector.broadcast %16 : vector<1x128xf32> to vector<8x128xf32>
      %18 = arith.mulf %15, %17 : vector<8x128xf32>
      %c0_16 = arith.constant 0 : index
      %c0_17 = arith.constant 0 : index
      %19 = vector.load %arg7[%c0_16, %c0_17] : memref<8x128xf32, #tpu.memory_space<vmem>>, vector<8x128xf32>
      tpu.vector_store %arg7[%c0_16, %c0_17], %18 {strides = array<i32>} : memref<8x128xf32, #tpu.memory_space<vmem>>, vector<8x128xf32>,
    } else {
    }
    return
  }
  func.func @transform_0(%arg0: i32, %arg1: i32, %arg2: i32) -> (i32, i32) {
    %c0_i32 = arith.constant 0 : i32
    return %arg0, %arg2 : i32, i32
  }
  func.func @transform_1(%arg0: i32, %arg1: i32, %arg2: i32) -> (i32, i32) {
    %c0_i32 = arith.constant 0 : i32
    return %arg2, %arg1 : i32, i32
  }
  func.func @transform_2(%arg0: i32, %arg1: i32, %arg2: i32) -> (i32, i32) {
    %c0_i32 = arith.constant 0 : i32
    %c0_i32_0 = arith.constant 0 : i32
    return %arg0, %c0_i32 : i32, i32
  }
  func.func @transform_3(%arg0: i32, %arg1: i32, %arg2: i32) -> (i32, i32) {
    %c0_i32 = arith.constant 0 : i32
    %c0_i32_0 = arith.constant 0 : i32
    return %c0_i32, %arg1 : i32, i32
  }
  func.func @transform_4(%arg0: i32, %arg1: i32, %arg2: i32) -> (i32, i32) {
    %c0_i32 = arith.constant 0 : i32
    return %arg0, %arg1 : i32, i32
  }
}

</mosaic_0001>

<bundles_post_ra>
// kernel: tpu_custom_call.1
= control target key start
LH: loop header
LB: loop body
LE: loop exit
PB: predicated region body
PF: predicated region fallthrough
CT: control target
= control target key end

     0   :  { %9 = vsyncpa [#allocation4], 0  ;;  %s271_s0 = inlined_call_operand.vmem [shape: f32[8,32], index: 0, kind: input, shape index: {}]   ;;  %s272_s1 = inlined_call_operand.hbm [shape: f32[32,128], index: 1, kind: input, shape index: {}]   ;;  %s273_s2 = inlined_call_operand.vmem [shape: f32[8,1], index: 2, kind: input, shape index: {}]   ;;  %s274_s3 = inlined_call_operand.vmem [shape: f32[1,128], index: 3, kind: input, shape index: {}]   ;;  %s275_s4 = inlined_call_operand.hbm [shape: f32[8,128], index: 4, kind: output, shape index: {}]  }
   0x1   :  { %10 = vsyncpa [#allocation5], 0  ;;  %s224_s15 = smov [#allocation3]  }
   0x2   :  { %s18_s16 = sshll.u32 %s224_s15, 4  ;;  %s19_s16 = int_to_ptr.vmem [resolvable:$true] %s18_s16 }
   0x3   :  { %s188_s17 = scalar_lea.vmem %s19_s16, 512  ;;  %p193_p1 = scmp.lt.s32.totalorder %s19_s16, %s19_s16 }
   0x4   :  { %p189_p0 = scmp.ne.s32.totalorder %s19_s16, %s188_s17  ;;  %p194_p2 = scmp.lt.s32.totalorder %s188_s17, %s188_s17 }
   0x6   :  { %p195_p3 = por %p194_p2, %p193_p1 }
   0x8   :  { %p196_p4 = pnand %p195_p3, %p189_p0 }
   0xa   :  { %199 = shalt.err (!%p196_p4)
}
   0xb   :  { %s225_s18 = smov 128   ;;  %s226_s19 = smov 8  }
   0xc   :  { %24 = dma.hbm_to_vmem [thread:$0]  %s272_s1, 512, %s19_s16, [#allocation4], %s225_s18, %s225_s18, %s226_s19  }
   0xd   :  { %220 = dma.done.wait [#allocation4], 512  }
   0xe   :  { %221 = vsyncadd [#allocation4], 4294966784  ;;  %v227_v0 = vmov 0.0   ;;  %vm228_vm0 = vmmov 0   ;;  %v229_v1 = vmov 0   ;;  %v42_v2 = vld [vmem:[#allocation3 + $0x18] sm:$0xff] }
   0xf   :  { %161 = vmatprep.subr.mxu0 %v227_v0  ;;  %169 = vmatprep.mubr.msk.f32.mxu0 %vm228_vm0, %v227_v0  ;;  %v41_v3 = vld [vmem:[#allocation3 + $0x10] sm:$0xff]  ;;  %v123_v4 = vld [vmem:[%s273_s2] sm:$0xff]  ;;  %v40_v5 = vld [vmem:[#allocation3 + $0x8] sm:$0xff]  ;;  %vm43_vm1 = vcmask 261120   ;;  %s230_s2 = smov [#allocation6]  }
  0x10   :  { %179 = vset.pattern.permute.xlu0 %v229_v1  ;;  %162 = vmatpush3.msra.mxu0 %v42_v2  ;;  %v39_v6 = vld [vmem:[#allocation3] sm:$0xff]  ;;  %s145_s27 = sshll.u32 %s230_s2, 4  ;;  %s146_s27 = int_to_ptr.vmem [resolvable:$true] %s145_s27 }
  0x11   :  { %163 = vmatprep.subr.mxu0 %v227_v0  ;;  %126 = vperm.xlu0 %179, %v123_v4   ;;  %v38_v7 = vld [vmem:[%s271_s0] sm:$0xff]  ;;  %s200_s28 = scalar_lea.vmem %s146_s27, 128  ;;  %p205_p6 = scmp.lt.s32.totalorder %s146_s27, %s146_s27 }
  0x12   :  { %164 = vmatpush3.msra.mxu0 %v41_v3  ;;  %v155_v10 = vld [vmem:[%s274_s3] ss:$0 sm:$0xff]  ;;  %p201_p5 = scmp.ne.s32.totalorder %s146_s27, %s200_s28  ;;  %p206_p7 = scmp.lt.s32.totalorder %s200_s28, %s200_s28 }
  0x13   :  { %165 = vmatprep.subr.mxu0 %v227_v0 }
  0x14   :  { %166 = vmatpush3.msra.mxu0 %v40_v5  ;;  %p207_p8 = por %p206_p7, %p205_p6 }
  0x15   :  { %167 = vmatprep.subr.mxu0 %v227_v0 }
  0x16   :  { %168 = vmatpush3.msra.mxu0 %v39_v6  ;;  %p208_p9 = pnand %p207_p8, %p201_p5 }
  0x17   :  { %170 = vmatmul.mubr.msk.f32.vlgmr.msra.gmra.mxu0 %vm43_vm1, %v38_v7 }
  0x8c   :  { %v127_v8 = vpop.permute.xlu0 %126 }
  0xd7   :  { %v113_v9 = vpop.f32.mrf.mxu0 }
  0xd8   :  { %v129_v11 = vmul.f32 %v127_v8, %v113_v9 }
  0xd9   :  { %v171_v12 = vpop.f32.mrf.mxu0 }
  0xda   :  { %v137_v13 = vmul.f32 %v155_v10, %v129_v11 }
  0xdc   :  { %138 = vst [vmem:[#allocation6] sm:$0xff] %v137_v13 }
  0xdd   :  { %211 = shalt.err (!%p208_p9)
}
  0xde   :  { %148 = dma.vmem_to_hbm [thread:$0]  %s146_s27, 128, %s275_s4, [#allocation5]  }
  0xdf   :  { %222 = dma.done.wait [#allocation5], 128  }
  0xe0   :  { %223 = vsyncadd [#allocation5], 4294967168 }
  0xe1   :  { %152 = vsyncpa [#allocation4], 1 }
  0xe2   :  { %153 = vsyncpa [#allocation5], 1 }

</bundles_post_ra>
